<compile_context>
chip_gen: v6e
topology: v6e:2x2x1
jax: 0.10.0
libtpu: 0.0.40
codegen_flags: <defaults>
</compile_context>

<pallas_src>
import functools

import jax
import jax.numpy as jnp
from jax import lax
from jax.experimental import pallas as pl
from jax.experimental.pallas import tpu as pltpu

MAX_RATING = 5.0
MIN_RATING = 1.0
BN_EPS = 1e-5


# ---------------------------------------------------------------------------
# Kernel
# ---------------------------------------------------------------------------
def _content_based_kernel(idx_ref,                     # (TB, 1)   int32 user indices
                          genre_ref,                   # (TB, G)   f32 genre features
                          wg_ref,                      # (G, K1)   bf16 genre Linear, real cols at [U, U+D)
                          w1_ref,                      # (K1, 128) bf16 fc1: [E @ W1[:D] ; BNg-folded W1[D:]]
                          w2_ref, w3_ref,              # (128,64),(64,32) bf16 (BN folded)
                          w4_ref,                      # (8, 32)   bf16 fc4 row replicated over sublanes
                          bias_ref,                    # (5, 128)  f32 packed biases [bg_wide,b1,b2,b3,b4]
                          out_ref):                    # (1, TB)   f32 lane-dense ratings
    f32, bf16 = jnp.float32, jnp.bfloat16
    tb = genre_ref.shape[0]
    K1 = wg_ref.shape[1]          # num_users + emb_dim (<= 128)
    H1 = w1_ref.shape[1]
    H2 = w2_ref.shape[1]
    H3 = w3_ref.shape[1]

    bg = bias_ref[0:1, :K1]       # genre bias, already placed in cols [U, U+D)
    b1 = bias_ref[1:2, :H1]
    b2 = bias_ref[2:3, :H2]
    b3 = bias_ref[3:4, :H3]
    b4 = bias_ref[4:5, 0:1]

    # genre branch: Linear -> ReLU, computed at lane width K1 with zero columns in
    # [0, U) (weight/bias columns there are zero). BN_g is folded into w1_ref / b1.
    gin = genre_ref[...].astype(bf16)                                   # in-kernel f32 -> bf16 cast
    g = jnp.dot(gin, wg_ref[...], preferred_element_type=f32) + bg
    g = jnp.maximum(g, 0.0)                                             # (TB, K1) f32

    # user path: one-hot over columns [0, U) (valid indices are < U), built on the VPU.
    # Disjoint support from the genre columns, so "concat" is just an add.
    lane = lax.broadcasted_iota(jnp.int32, (tb, K1), 1)
    onehot = jnp.where(lane == idx_ref[...], 1.0, 0.0)                  # (TB, K1) f32
    x = (g + onehot).astype(bf16)                                       # fused [onehot | genre_emb]

    # fc1: single matmul; embedding table (user half) and BN_g (genre half) are folded
    # into w1_ref, so concat@W1 == x @ w1_ref exactly.
    h = jnp.dot(x, w1_ref[...], preferred_element_type=f32) + b1
    h = jnp.maximum(h, 0.0).astype(bf16)

    # fc2 / fc3
    h = jnp.dot(h, w2_ref[...], preferred_element_type=f32) + b2
    h = jnp.maximum(h, 0.0).astype(bf16)
    h = jnp.dot(h, w3_ref[...], preferred_element_type=f32) + b3
    h = jnp.maximum(h, 0.0).astype(bf16)

    # fc4 (32 -> 1), computed transposed: (8, TB) = w4_rows(8,32) . h(TB,32)^T — same NT
    # dot_general pattern as q @ k^T in flash attention (MXU-native, no XLU transpose),
    # giving a lane-dense result so the output store is an unmasked full-lane store.
    logits = lax.dot_general(w4_ref[...], h, (((1,), (1,)), ((), ())),
                             preferred_element_type=f32)
    logit = logits[0:1, :] + b4
    rating = jax.nn.sigmoid(logit) * (MAX_RATING - MIN_RATING) + MIN_RATING
    out_ref[...] = rating.astype(out_ref.dtype)


# ---------------------------------------------------------------------------
# Parameter construction (PyTorch-equivalent raw params) + one-time folding
# ---------------------------------------------------------------------------
def _xavier_uniform(key, fan_in, fan_out):
    bound = jnp.sqrt(6.0 / (fan_in + fan_out))
    # stored as (in, out) so the kernel computes x @ W directly
    return jax.random.uniform(key, (fan_in, fan_out), jnp.float32, -bound, bound)


def init_params(key, num_users, num_genres, embedding_dim=32):
    ks = jax.random.split(key, 7)
    D = embedding_dim
    params = {
        "user_embedding": 0.01 * jax.random.normal(ks[0], (num_users, D), jnp.float32),
        "wg": _xavier_uniform(ks[1], num_genres, D), "bg": jnp.zeros((D,), jnp.float32),
        "w1": _xavier_uniform(ks[2], 2 * D, 128),    "b1": jnp.zeros((128,), jnp.float32),
        "w2": _xavier_uniform(ks[3], 128, 64),       "b2": jnp.zeros((64,), jnp.float32),
        "w3": _xavier_uniform(ks[4], 64, 32),        "b3": jnp.zeros((32,), jnp.float32),
        "w4": _xavier_uniform(ks[5], 32, 1),         "b4": jnp.zeros((1,), jnp.float32),
    }
    # Eval-mode BatchNorm1d params. Randomized running stats / affine params stand in
    # for a trained model so the BN folding is actually exercised.
    bn_key = ks[6]
    for name, dim in (("g", D), ("1", 128), ("2", 64), ("3", 32)):
        bn_key, k1, k2, k3, k4 = jax.random.split(bn_key, 5)
        params[f"gamma_{name}"] = jax.random.uniform(k1, (dim,), jnp.float32, 0.5, 1.5)
        params[f"beta_{name}"] = 0.1 * jax.random.normal(k2, (dim,), jnp.float32)
        params[f"mean_{name}"] = 0.1 * jax.random.normal(k3, (dim,), jnp.float32)
        params[f"var_{name}"] = jax.random.uniform(k4, (dim,), jnp.float32, 0.5, 1.5)
    return params


def fold_params(params):
    """One-time constant folding (call once, outside the per-batch forward):
       * fold each eval-mode BatchNorm (scale, shift) into the NEXT layer's weights/bias,
       * fold the user-embedding table into fc1's user half (E @ W1[:D]) so the in-kernel
         one-hot feeds fc1 directly (no separate gather matmul),
       * widen the genre Linear to lane width K1 = U + D (zero cols in [0, U)),
       * cast MXU operands to bf16 and pack the small biases into one (5, 128) f32 array."""
    f32, bf16 = jnp.float32, jnp.bfloat16
    E = params["user_embedding"]                # (U, D)
    U, D = E.shape
    G = params["wg"].shape[0]
    H1, H2, H3 = params["w1"].shape[1], params["w2"].shape[1], params["w3"].shape[1]
    K1 = U + D
    assert K1 <= 128, "one-hot/folded-embedding path assumes num_users + emb_dim <= 128"
    assert max(H1, H2, H3) <= 128, "bias pack assumes feature widths <= 128"

    def bn(prefix):
        s = params[f"gamma_{prefix}"] / jnp.sqrt(params[f"var_{prefix}"] + BN_EPS)
        t = params[f"beta_{prefix}"] - params[f"mean_{prefix}"] * s
        return s, t

    sg, tg = bn("g")
    s1, t1 = bn("1")
    s2, t2 = bn("2")
    s3, t3 = bn("3")

    W1 = params["w1"]                          # (2D, 128)
    W1u, W1g = W1[:D], W1[D:]
    # fc1: user half absorbs the embedding table, genre half absorbs BN_g scale/shift.
    w1_big = jnp.concatenate([E @ W1u, sg[:, None] * W1g], axis=0)       # (K1, 128)
    b1 = params["b1"] + tg @ W1g
    w2 = s1[:, None] * params["w2"]
    b2 = params["b2"] + t1 @ params["w2"]
    w3 = s2[:, None] * params["w3"]
    b3 = params["b3"] + t2 @ params["w3"]
    w4 = s3[:, None] * params["w4"]            # (32, 1)
    b4 = params["b4"] + t3 @ params["w4"]      # (1,)

    # genre Linear widened to K1 output columns; real columns live at [U, U+D).
    wg_wide = jnp.zeros((G, K1), f32).at[:, U:].set(params["wg"])

    bias = jnp.zeros((5, 128), f32)
    bias = bias.at[0, U:K1].set(params["bg"])
    bias = bias.at[1, :H1].set(b1)
    bias = bias.at[2, :H2].set(b2)
    bias = bias.at[3, :H3].set(b3)
    bias = bias.at[4, 0].set(b4[0])

    return {
        "wg_wide": wg_wide.astype(bf16),
        "w1": w1_big.astype(bf16),
        "w2": w2.astype(bf16),
        "w3": w3.astype(bf16),
        # replicate the (1, 32) final-layer row across 8 sublanes so the NT matmul
        # never has a degenerate M=1 LHS; the kernel reads row 0 of the result.
        "w4r": jnp.broadcast_to(w4.T, (8, H3)).astype(bf16),
        "bias": bias,
    }


# ---------------------------------------------------------------------------
# Forward
# ---------------------------------------------------------------------------
def _round_up(x, m):
    return ((x + m - 1) // m) * m


@functools.partial(jax.jit, static_argnames=("block_rows",))
def content_based_forward(prepared, user_indices, genre_features, block_rows=1024):
    """Pallas-backed forward pass of ContentBasedNN (inference mode).

    All per-row work (gather, cast, MLP) happens inside the kernel; the wrapper only
    reshapes the index vector. block_rows is the max batch tile (sweep 512-2048 for
    production batch sizes; the small-tile path below is exercised only in tests)."""
    assert block_rows % 128 == 0
    B = user_indices.shape[0]
    G = genre_features.shape[1]

    idx2d = user_indices.astype(jnp.int32).reshape(B, 1)      # metadata-only reshape

    # Batch tile: multiple of 128 (lane-dense output blocks), capped at ~ceil(B/2) so
    # the grid has >= 2 steps whenever B > 128 and both v7x TensorCores get work.
    # No padding of the activations: the last block may be ragged; its out-of-bounds
    # rows are row-wise garbage whose outputs are masked on store / sliced off below.
    tb = min(block_rows, _round_up(pl.cdiv(B, 2), 128))
    nb = pl.cdiv(B, tb)

    def const(arr):  # whole-array block, fetched once and resident across all grid steps
        return pl.BlockSpec(arr.shape, lambda i: (0, 0))

    out = pl.pallas_call(
        _content_based_kernel,
        out_shape=jax.ShapeDtypeStruct((1, B), jnp.float32),
        grid=(nb,),
        in_specs=[
            pl.BlockSpec((tb, 1), lambda i: (i, 0)),     # user indices (int32)
            pl.BlockSpec((tb, G), lambda i: (i, 0)),     # genre features (f32, cast in-kernel)
            const(prepared["wg_wide"]),
            const(prepared["w1"]),
            const(prepared["w2"]),
            const(prepared["w3"]),
            const(prepared["w4r"]),
            const(prepared["bias"]),
        ],
        out_specs=pl.BlockSpec((1, tb), lambda i: (0, i)),   # lane-dense output row
        compiler_params=pltpu.CompilerParams(
            dimension_semantics=("parallel",),               # shard batch over v7x's 2 TCs
            # ~0.5 MiB double-buffered I/O + ~1.5 MiB f32 intermediates at tb=1024;
            # explicit limit keeps us inside v5e's 16 MiB / v7x's 32 MiB scoped defaults.
            vmem_limit_bytes=32 * 1024 * 1024,
        ),
    )(idx2d, genre_features, prepared["wg_wide"], prepared["w1"],
      prepared["w2"], prepared["w3"], prepared["w4r"], prepared["bias"])

    return out[0, :B]                                        # (B,), matches torch .squeeze() for B > 1


# ---------------------------------------------------------------------------
# Pure-JAX f32 reference (eval mode) for correctness checking
# ---------------------------------------------------------------------------
def _reference_forward(params, user_indices, genre_features):
    def bn(x, prefix):
        s = params[f"gamma_{prefix}"] / jnp.sqrt(params[f"var_{prefix}"] + BN_EPS)
        return (x - params[f"mean_{prefix}"]) * s + params[f"beta_{prefix}"]

    u = jnp.take(params["user_embedding"], user_indices, axis=0)
    g = bn(jnp.maximum(genre_features @ params["wg"] + params["bg"], 0.0), "g")
    x = jnp.concatenate([u, g], axis=1)
    h = bn(jnp.maximum(x @ params["w1"] + params["b1"], 0.0), "1")
    h = bn(jnp.maximum(h @ params["w2"] + params["b2"], 0.0), "2")
    h = bn(jnp.maximum(h @ params["w3"] + params["b3"], 0.0), "3")
    logit = h @ params["w4"] + params["b4"]
    return jnp.squeeze(jax.nn.sigmoid(logit) * (MAX_RATING - MIN_RATING) + MIN_RATING, -1)


if __name__ == "__main__":
    key = jax.random.PRNGKey(0)
    k_param, k_user, k_genre = jax.random.split(key, 3)

    NUM_USERS, NUM_GENRES, EMB_DIM = 64, 16, 32
    params = init_params(k_param, NUM_USERS, NUM_GENRES, EMB_DIM)
    prepared = fold_params(params)

    # 1) tiny batch: single (internally padded) grid step
    B1 = 8
    idx1 = jax.random.randint(k_user, (B1,), 0, NUM_USERS, dtype=jnp.int32)
    gf1 = jax.random.bernoulli(k_genre, 0.3, (B1, NUM_GENRES)).astype(jnp.float32)
    out1 = jax.block_until_ready(content_based_forward(prepared, idx1, gf1))
    ref1 = _reference_forward(params, idx1, gf1)
    assert out1.shape == (B1,)
    assert jnp.allclose(out1, ref1, atol=5e-2), (out1, ref1)

    # 2) medium batch, default tiling: tb=256 -> two grid steps (both TCs busy on v7x),
    #    with a ragged 44-row tail block handled by Pallas (no wrapper-side padding).
    B2 = 300
    k_user2, k_genre2 = jax.random.split(jax.random.PRNGKey(1), 2)
    idx2 = jax.random.randint(k_user2, (B2,), 0, NUM_USERS, dtype=jnp.int32)
    gf2 = jax.random.bernoulli(k_genre2, 0.3, (B2, NUM_GENRES)).astype(jnp.float32)
    out2 = jax.block_until_ready(content_based_forward(prepared, idx2, gf2))
    ref2 = _reference_forward(params, idx2, gf2)
    assert out2.shape == (B2,)
    assert jnp.allclose(out2, ref2, atol=5e-2), float(jnp.max(jnp.abs(out2 - ref2)))

    # 3) same batch with small tiles: 3 pipelined grid steps + ragged tail (test-only path)
    out3 = jax.block_until_ready(content_based_forward(prepared, idx2, gf2, block_rows=128))
    assert jnp.allclose(out3, ref2, atol=5e-2), float(jnp.max(jnp.abs(out3 - ref2)))

    print("KERNEL_OK")
</pallas_src>

<mosaic_0001>
module attributes {stable_mosaic.version = 11 : i64} {
  func.func @_content_based_kernel(%arg0: i32, %arg1: memref<128x1xi32, #tpu.memory_space<vmem>>, %arg2: memref<128x16xf32, #tpu.memory_space<vmem>>, %arg3: memref<16x96xbf16, #tpu.memory_space<vmem>>, %arg4: memref<96x128xbf16, #tpu.memory_space<vmem>>, %arg5: memref<128x64xbf16, #tpu.memory_space<vmem>>, %arg6: memref<64x32xbf16, #tpu.memory_space<vmem>>, %arg7: memref<8x32xbf16, #tpu.memory_space<vmem>>, %arg8: memref<5x128xf32, #tpu.memory_space<vmem>>, %arg9: memref<1x128xf32, #tpu.memory_space<vmem>>) attributes {dimension_semantics = [#tpu.dimension_semantics<parallel>], iteration_bounds = array<i64: 1>, scalar_prefetch = 0 : i64, scratch_operands = 0 : i64, tpu.core_type = #tpu.core_type<tc>, window_params = [{transform_indices = @transform_0, window_bounds = array<i64: 128, 1>}, {transform_indices = @transform_1, window_bounds = array<i64: 128, 16>}, {pipeline_mode = #tpu.pipeline_mode<synchronous>, transform_indices = @transform_2, window_bounds = array<i64: 16, 96>}, {pipeline_mode = #tpu.pipeline_mode<synchronous>, transform_indices = @transform_3, window_bounds = array<i64: 96, 128>}, {pipeline_mode = #tpu.pipeline_mode<synchronous>, transform_indices = @transform_4, window_bounds = array<i64: 128, 64>}, {pipeline_mode = #tpu.pipeline_mode<synchronous>, transform_indices = @transform_5, window_bounds = array<i64: 64, 32>}, {pipeline_mode = #tpu.pipeline_mode<synchronous>, transform_indices = @transform_6, window_bounds = array<i64: 8, 32>}, {pipeline_mode = #tpu.pipeline_mode<synchronous>, transform_indices = @transform_7, window_bounds = array<i64: 5, 128>}, {transform_indices = @transform_8, window_bounds = array<i64: 1, 128>}]} {
    %c0 = arith.constant 0 : index
    %c0_0 = arith.constant 0 : index
    %0 = vector.load %arg8[%c0, %c0_0] : memref<5x128xf32, #tpu.memory_space<vmem>>, vector<1x96xf32>
    %c1 = arith.constant 1 : index
    %c0_1 = arith.constant 0 : index
    %1 = vector.load %arg8[%c1, %c0_1] : memref<5x128xf32, #tpu.memory_space<vmem>>, vector<1x128xf32>
    %c2 = arith.constant 2 : index
    %c0_2 = arith.constant 0 : index
    %2 = vector.load %arg8[%c2, %c0_2] : memref<5x128xf32, #tpu.memory_space<vmem>>, vector<1x64xf32>
    %c3 = arith.constant 3 : index
    %c0_3 = arith.constant 0 : index
    %3 = vector.load %arg8[%c3, %c0_3] : memref<5x128xf32, #tpu.memory_space<vmem>>, vector<1x32xf32>
    %c4 = arith.constant 4 : index
    %c0_4 = arith.constant 0 : index
    %4 = vector.load %arg8[%c4, %c0_4] : memref<5x128xf32, #tpu.memory_space<vmem>>, vector<1x1xf32>
    %c0_5 = arith.constant 0 : index
    %c0_6 = arith.constant 0 : index
    %5 = vector.load %arg2[%c0_5, %c0_6] : memref<128x16xf32, #tpu.memory_space<vmem>>, vector<128x16xf32>
    %6 = arith.truncf %5 : vector<128x16xf32> to vector<128x16xbf16>
    %c0_7 = arith.constant 0 : index
    %c0_8 = arith.constant 0 : index
    %7 = vector.load %arg3[%c0_7, %c0_8] : memref<16x96xbf16, #tpu.memory_space<vmem>>, vector<16x96xbf16>
    %cst = arith.constant dense<0.000000e+00> : vector<128x96xf32>
    %8 = tpu.matmul %6, %7, %cst {dimension_numbers = #tpu.dot_dimension_numbers<[1], [0], [0], [1], [0, 0, 1, 1], [], []>} : vector<128x16xbf16>, vector<16x96xbf16>, vector<128x96xf32> -> vector<128x96xf32>
    %9 = vector.broadcast %0 : vector<1x96xf32> to vector<128x96xf32>
    %10 = arith.addf %8, %9 : vector<128x96xf32>
    %cst_9 = arith.constant 0.000000e+00 : f32
    %11 = vector.broadcast %cst_9 : f32 to vector<128x96xf32>
    %12 = arith.maximumf %10, %11 : vector<128x96xf32>
    %13 = tpu.iota {dimensions = array<i32: 1>} : vector<128x96xi32>
    %c0_10 = arith.constant 0 : index
    %c0_11 = arith.constant 0 : index
    %14 = vector.load %arg1[%c0_10, %c0_11] : memref<128x1xi32, #tpu.memory_space<vmem>>, vector<128x1xi32>
    %15 = vector.broadcast %14 : vector<128x1xi32> to vector<128x96xi32>
    %16 = arith.cmpi eq, %13, %15 : vector<128x96xi32>
    %cst_12 = arith.constant 1.000000e+00 : f32
    %cst_13 = arith.constant 0.000000e+00 : f32
    %17 = vector.broadcast %cst_12 : f32 to vector<128x96xf32>
    %18 = vector.broadcast %cst_13 : f32 to vector<128x96xf32>
    %19 = arith.select %16, %17, %18 : vector<128x96xi1>, vector<128x96xf32>
    %20 = arith.addf %12, %19 : vector<128x96xf32>
    %21 = arith.truncf %20 : vector<128x96xf32> to vector<128x96xbf16>
    %c0_14 = arith.constant 0 : index
    %c0_15 = arith.constant 0 : index
    %22 = vector.load %arg4[%c0_14, %c0_15] : memref<96x128xbf16, #tpu.memory_space<vmem>>, vector<96x128xbf16>
    %cst_16 = arith.constant dense<0.000000e+00> : vector<128x128xf32>
    %23 = tpu.matmul %21, %22, %cst_16 {dimension_numbers = #tpu.dot_dimension_numbers<[1], [0], [0], [1], [0, 0, 1, 1], [], []>} : vector<128x96xbf16>, vector<96x128xbf16>, vector<128x128xf32> -> vector<128x128xf32>
    %24 = vector.broadcast %1 : vector<1x128xf32> to vector<128x128xf32>
    %25 = arith.addf %23, %24 : vector<128x128xf32>
    %cst_17 = arith.constant 0.000000e+00 : f32
    %26 = vector.broadcast %cst_17 : f32 to vector<128x128xf32>
    %27 = arith.maximumf %25, %26 : vector<128x128xf32>
    %28 = arith.truncf %27 : vector<128x128xf32> to vector<128x128xbf16>
    %c0_18 = arith.constant 0 : index
    %c0_19 = arith.constant 0 : index
    %29 = vector.load %arg5[%c0_18, %c0_19] : memref<128x64xbf16, #tpu.memory_space<vmem>>, vector<128x64xbf16>
    %cst_20 = arith.constant dense<0.000000e+00> : vector<128x64xf32>
    %30 = tpu.matmul %28, %29, %cst_20 {dimension_numbers = #tpu.dot_dimension_numbers<[1], [0], [0], [1], [0, 0, 1, 1], [], []>} : vector<128x128xbf16>, vector<128x64xbf16>, vector<128x64xf32> -> vector<128x64xf32>
    %31 = vector.broadcast %2 : vector<1x64xf32> to vector<128x64xf32>
    %32 = arith.addf %30, %31 : vector<128x64xf32>
    %cst_21 = arith.constant 0.000000e+00 : f32
    %33 = vector.broadcast %cst_21 : f32 to vector<128x64xf32>
    %34 = arith.maximumf %32, %33 : vector<128x64xf32>
    %35 = arith.truncf %34 : vector<128x64xf32> to vector<128x64xbf16>
    %c0_22 = arith.constant 0 : index
    %c0_23 = arith.constant 0 : index
    %36 = vector.load %arg6[%c0_22, %c0_23] : memref<64x32xbf16, #tpu.memory_space<vmem>>, vector<64x32xbf16>
    %cst_24 = arith.constant dense<0.000000e+00> : vector<128x32xf32>
    %37 = tpu.matmul %35, %36, %cst_24 {dimension_numbers = #tpu.dot_dimension_numbers<[1], [0], [0], [1], [0, 0, 1, 1], [], []>} : vector<128x64xbf16>, vector<64x32xbf16>, vector<128x32xf32> -> vector<128x32xf32>
    %38 = vector.broadcast %3 : vector<1x32xf32> to vector<128x32xf32>
    %39 = arith.addf %37, %38 : vector<128x32xf32>
    %cst_25 = arith.constant 0.000000e+00 : f32
    %40 = vector.broadcast %cst_25 : f32 to vector<128x32xf32>
    %41 = arith.maximumf %39, %40 : vector<128x32xf32>
    %42 = arith.truncf %41 : vector<128x32xf32> to vector<128x32xbf16>
    %c0_26 = arith.constant 0 : index
    %c0_27 = arith.constant 0 : index
    %43 = vector.load %arg7[%c0_26, %c0_27] : memref<8x32xbf16, #tpu.memory_space<vmem>>, vector<8x32xbf16>
    %cst_28 = arith.constant dense<0.000000e+00> : vector<8x128xf32>
    %44 = tpu.matmul %43, %42, %cst_28 {dimension_numbers = #tpu.dot_dimension_numbers<[1], [1], [0], [0], [0, 0, 1, 0], [], []>} : vector<8x32xbf16>, vector<128x32xbf16>, vector<8x128xf32> -> vector<8x128xf32>
    %45 = vector.extract_strided_slice %44 {offsets = [0, 0], sizes = [1, 128], strides = [1, 1]} : vector<8x128xf32> to vector<1x128xf32>
    %46 = vector.broadcast %4 : vector<1x1xf32> to vector<1x128xf32>
    %47 = arith.addf %45, %46 : vector<1x128xf32>
    %48 = arith.negf %47 : vector<1x128xf32>
    %49 = math.exp %48 : vector<1x128xf32>
    %cst_29 = arith.constant 1.000000e+00 : f32
    %50 = vector.broadcast %cst_29 : f32 to vector<1x128xf32>
    %51 = arith.addf %50, %49 : vector<1x128xf32>
    %52 = arith.divf %50, %51 : vector<1x128xf32>
    %cst_30 = arith.constant 4.000000e+00 : f32
    %53 = vector.broadcast %cst_30 : f32 to vector<1x128xf32>
    %54 = arith.mulf %52, %53 : vector<1x128xf32>
    %cst_31 = arith.constant 1.000000e+00 : f32
    %55 = vector.broadcast %cst_31 : f32 to vector<1x128xf32>
    %56 = arith.addf %54, %55 : vector<1x128xf32>
    %c0_32 = arith.constant 0 : index
    %c0_33 = arith.constant 0 : index
    %57 = vector.load %arg9[%c0_32, %c0_33] : memref<1x128xf32, #tpu.memory_space<vmem>>, vector<1x128xf32>
    tpu.vector_store %arg9[%c0_32, %c0_33], %56 {strides = array<i32>} : memref<1x128xf32, #tpu.memory_space<vmem>>, vector<1x128xf32>,
    return
  }
  func.func @transform_0(%arg0: i32) -> (i32, i32) {
    %c0_i32 = arith.constant 0 : i32
    %c0_i32_0 = arith.constant 0 : i32
    return %arg0, %c0_i32 : i32, i32
  }
  func.func @transform_1(%arg0: i32) -> (i32, i32) {
    %c0_i32 = arith.constant 0 : i32
    %c0_i32_0 = arith.constant 0 : i32
    return %arg0, %c0_i32 : i32, i32
  }
  func.func @transform_2(%arg0: i32) -> (i32, i32) {
    %c0_i32 = arith.constant 0 : i32
    %c0_i32_0 = arith.constant 0 : i32
    %c0_i32_1 = arith.constant 0 : i32
    return %c0_i32, %c0_i32_0 : i32, i32
  }
  func.func @transform_3(%arg0: i32) -> (i32, i32) {
    %c0_i32 = arith.constant 0 : i32
    %c0_i32_0 = arith.constant 0 : i32
    %c0_i32_1 = arith.constant 0 : i32
    return %c0_i32, %c0_i32_0 : i32, i32
  }
  func.func @transform_4(%arg0: i32) -> (i32, i32) {
    %c0_i32 = arith.constant 0 : i32
    %c0_i32_0 = arith.constant 0 : i32
    %c0_i32_1 = arith.constant 0 : i32
    return %c0_i32, %c0_i32_0 : i32, i32
  }
  func.func @transform_5(%arg0: i32) -> (i32, i32) {
    %c0_i32 = arith.constant 0 : i32
    %c0_i32_0 = arith.constant 0 : i32
    %c0_i32_1 = arith.constant 0 : i32
    return %c0_i32, %c0_i32_0 : i32, i32
  }
  func.func @transform_6(%arg0: i32) -> (i32, i32) {
    %c0_i32 = arith.constant 0 : i32
    %c0_i32_0 = arith.constant 0 : i32
    %c0_i32_1 = arith.constant 0 : i32
    return %c0_i32, %c0_i32_0 : i32, i32
  }
  func.func @transform_7(%arg0: i32) -> (i32, i32) {
    %c0_i32 = arith.constant 0 : i32
    %c0_i32_0 = arith.constant 0 : i32
    %c0_i32_1 = arith.constant 0 : i32
    return %c0_i32, %c0_i32_0 : i32, i32
  }
  func.func @transform_8(%arg0: i32) -> (i32, i32) {
    %c0_i32 = arith.constant 0 : i32
    %c0_i32_0 = arith.constant 0 : i32
    return %c0_i32, %arg0 : i32, i32
  }
}

</mosaic_0001>

<bundles_post_ra>
// kernel: content_based_forward.1
= control target key start
LH: loop header
LB: loop body
LE: loop exit
PB: predicated region body
PF: predicated region fallthrough
CT: control target
= control target key end

     0   :  { %vm72_vm0 = vcmask 130048   ;;  %v1281_v8 = vmov 0   ;;  %s1629_s0 = inlined_call_operand.vmem [shape: s32[8,1], index: 0, kind: input, shape index: {}]   ;;  %s1630_s1 = inlined_call_operand.vmem [shape: f32[8,16], index: 1, kind: input, shape index: {}]   ;;  %s1631_s2 = inlined_call_operand.vmem [shape: bf16[16,96], index: 2, kind: input, shape index: {}]   ;;  %s1632_s3 = inlined_call_operand.vmem [shape: bf16[96,128], index: 3, kind: input, shape index: {}]   ;;  %s1633_s4 = inlined_call_operand.vmem [shape: bf16[128,64], index: 4, kind: input, shape index: {}]   ;;  %s1634_s5 = inlined_call_operand.vmem [shape: bf16[64,32], index: 5, kind: input, shape index: {}]   ;;  %s1635_s6 = inlined_call_operand.vmem [shape: bf16[8,32], index: 6, kind: input, shape index: {}]   ;;  %s1636_s7 = inlined_call_operand.vmem [shape: f32[5,128], index: 7, kind: input, shape index: {}]   ;;  %s1637_s8 = inlined_call_operand.hbm [shape: f32[1,8], index: 8, kind: output, shape index: {}]  }
   0x1   :  { %v1236_v0 = vld [vmem:[%s1631_s2] sm:$0xff]   ;;  %v37_v2 = vld [vmem:[%s1630_s1 + $0x8] sm:$0xff]  ;;  %v38_v3 = vld [vmem:[%s1630_s1 + $0x10] sm:$0xff]  ;;  %1234 = vset.pattern.permute.xlu0 %v1281_v8  ;;  %1235 = vset.pattern.permute.xlu1 %v1281_v8 }
   0x2   :  { %v36_v1 = vld [vmem:[%s1630_s1] sm:$0xff]  ;;  %1108 = vmatprep.subr.bf16.mxu1 %v1236_v0  ;;  %v39_v5 = vld [vmem:[%s1630_s1 + $0x18] sm:$0xff]  ;;  %v41_v7 = vld [vmem:[%s1630_s1 + $0x28] sm:$0xff] }
   0x3   :  { %v52_v4 = vpack.c.bf16 %v37_v2, %v36_v1  ;;  %v40_v6 = vld [vmem:[%s1630_s1 + $0x20] sm:$0xff]  ;;  %1109 = vmatpush3.bf16.msra.mxu1 %v1236_v0  ;;  %v53_v9 = vpack.c.bf16 %v39_v5, %v38_v3  ;;  %v42_v12 = vld [vmem:[%s1630_s1 + $0x30] sm:$0xff]  ;;  %v43_v13 = vld [vmem:[%s1630_s1 + $0x38] sm:$0xff] }
   0x4   :  { %v54_v10 = vpack.c.bf16 %v41_v7, %v40_v6  ;;  %v212_v11 = vld [vmem:[%s1629_s0] sm:$0xff]  ;;  %v214_v14 = vld [vmem:[%s1629_s0 + $0x10] sm:$0xff]  ;;  %v45_v16 = vld [vmem:[%s1630_s1 + $0x48] sm:$0xff]  ;;  %v55_v19 = vpack.c.bf16 %v43_v13, %v42_v12 }
   0x5   :  { %1110 = vmatprep.mubr.msk.bf16.mxu1 %vm72_vm0, %v52_v4  ;;  %229 = vperm.xlu0 %1234, %v212_v11   ;;  %v44_v15 = vld [vmem:[%s1630_s1 + $0x40] sm:$0xff]  ;;  %v213_v17 = vld [vmem:[%s1629_s0 + $0x8] sm:$0xff]  ;;  %v215_v18 = vld [vmem:[%s1629_s0 + $0x18] sm:$0xff] }
   0x6   :  { %1111 = vmatmul.mubr.msk.bf16.vlgmr.msra.gmra.mxu1 %vm72_vm0, %v53_v9  ;;  %235 = vperm.xlu1 %1235, %v214_v14   ;;  %v56_v20 = vpack.c.bf16 %v45_v16, %v44_v15  ;;  %v216_v21 = vld [vmem:[%s1629_s0 + $0x20] sm:$0xff]  ;;  %v217_v22 = vld [vmem:[%s1629_s0 + $0x28] sm:$0xff]  ;;  %v46_v24 = vld [vmem:[%s1630_s1 + $0x50] sm:$0xff] }
   0x7   :  { %1114 = vmatprep.mubr.msk.bf16.mxu1 %vm72_vm0, %v54_v10  ;;  %v1237_v23 = vld [vmem:[%s1632_s3 + $0x28] sm:$0xff]   ;;  %v47_v25 = vld [vmem:[%s1630_s1 + $0x58] sm:$0xff]  ;;  %v48_v26 = vld [vmem:[%s1630_s1 + $0x60] sm:$0xff] }
   0x8   :  { %v49_v27 = vld [vmem:[%s1630_s1 + $0x68] sm:$0xff]  ;;  %v218_v28 = vld [vmem:[%s1629_s0 + $0x30] sm:$0xff]  ;;  %1126 = vmatprep.subr.bf16.mxu1 %v1237_v23  ;;  %v219_v29 = vld [vmem:[%s1629_s0 + $0x38] sm:$0xff]  ;;  %v57_v30 = vpack.c.bf16 %v47_v25, %v46_v24 }
   0x9   :  { %232 = vperm.xlu0 %1234, %v213_v17   ;;  %1127 = vmatpush3.bf16.msra.mxu1 %v1237_v23  ;;  %v220_v31 = vld [vmem:[%s1629_s0 + $0x40] sm:$0xff]  ;;  %v58_v32 = vpack.c.bf16 %v49_v27, %v48_v26  ;;  %v221_v33 = vld [vmem:[%s1629_s0 + $0x48] sm:$0xff]  ;;  %v50_v35 = vld [vmem:[%s1630_s1 + $0x70] sm:$0xff] }
   0xa   :  { %238 = vperm.xlu1 %1235, %v215_v18   ;;  %v1238_v34 = vld [vmem:[%s1632_s3 + $0x20] sm:$0xff]   ;;  %v51_v36 = vld [vmem:[%s1630_s1 + $0x78] sm:$0xff]  ;;  %v222_v37 = vld [vmem:[%s1629_s0 + $0x50] sm:$0xff] }
   0xb   :  { %1128 = vmatprep.subr.bf16.mxu1 %v1238_v34  ;;  %v1239_v38 = vld [vmem:[%s1632_s3 + $0x18] sm:$0xff]  }
   0xc   :  { %v223_v39 = vld [vmem:[%s1629_s0 + $0x58] sm:$0xff] }
   0xd   :  { %241 = vperm.xlu0 %1234, %v216_v21   ;;  %1129 = vmatpush3.bf16.msra.mxu1 %v1238_v34 }
   0xe   :  { %1115 = vmatmul.mubr.msk.bf16.gmra.mxu1 %vm72_vm0, %v55_v19  ;;  %244 = vperm.xlu1 %1235, %v217_v22  }
   0xf   :  { %1118 = vmatprep.mubr.msk.bf16.mxu1 %vm72_vm0, %v56_v20 }
  0x11   :  { %247 = vperm.xlu0 %1234, %v218_v28  }
  0x12   :  { %250 = vperm.xlu1 %1235, %v219_v29  }
  0x15   :  { %253 = vperm.xlu0 %1234, %v220_v31  }
  0x16   :  { %1119 = vmatmul.mubr.msk.bf16.gmra.mxu1 %vm72_vm0, %v57_v30  ;;  %256 = vperm.xlu1 %1235, %v221_v33  }
  0x17   :  { %1122 = vmatprep.mubr.msk.bf16.mxu1 %vm72_vm0, %v58_v32 }
  0x18   :  { %13 = vsyncpa [#allocation3], 0  ;;  %v59_v40 = vpack.c.bf16 %v51_v36, %v50_v35  ;;  %1130 = vmatprep.subr.bf16.mxu1 %v1239_v38  ;;  %v224_v41 = vld [vmem:[%s1629_s0 + $0x60] sm:$0xff]  ;;  %v1240_v42 = vld [vmem:[%s1632_s3 + $0x10] sm:$0xff]   ;;  %v210_v59 = vlaneseq  ;;  %v1282_v7 = vmov 0.0   ;;  %vm384_vm5 = vcmask 785408  }
  0x19   :  { %259 = vperm.xlu0 %1234, %v222_v37   ;;  %1131 = vmatpush3.bf16.msra.mxu1 %v1239_v38  ;;  %v225_v43 = vld [vmem:[%s1629_s0 + $0x68] sm:$0xff]  ;;  %v226_v44 = vld [vmem:[%s1629_s0 + $0x70] sm:$0xff]  ;;  %v227_v45 = vld [vmem:[%s1629_s0 + $0x78] sm:$0xff]  ;;  %s1284_s18 = smov [#allocation2]  }
  0x1a   :  { %262 = vperm.xlu1 %1235, %v223_v39   ;;  %1132 = vmatprep.subr.bf16.mxu1 %v1240_v42  ;;  %v35_v46 = vld [vmem:[%s1636_s7 + $0x4] sm:$0x1]  ;;  %v1241_v47 = vld [vmem:[%s1632_s3 + $0x8] sm:$0xff]   ;;  %v1243_v49 = vld [vmem:[%s1633_s4 + $0x38] sm:$0xff]   ;;  %v1478_v63 = vand.u32 127, %v210_v59 }
  0x1b   :  { %v1242_v48 = vld [vmem:[%s1632_s3] sm:$0xff]   ;;  %v1244_v50 = vld [vmem:[%s1633_s4 + $0x30] sm:$0xff]   ;;  %1154 = vmatprep.subr.bf16.mxu0 %v1243_v49  ;;  %v1245_v51 = vld [vmem:[%s1633_s4 + $0x28] sm:$0xff]   ;;  %s991_s3 = sshll.u32 %s1284_s18, 4  ;;  %s992_s3 = int_to_ptr.vmem [resolvable:$true] %s991_s3 }
  0x1c   :  { %1155 = vmatpush3.bf16.msra.mxu0 %v1243_v49  ;;  %v1246_v52 = vld [vmem:[%s1633_s4 + $0x20] sm:$0xff]   ;;  %v1247_v53 = vld [vmem:[%s1633_s4 + $0x18] sm:$0xff]   ;;  %s1263_s19 = scalar_lea.vmem %s992_s3, 32  ;;  %p1264_p1 = scmp.lt.s32.totalorder %s992_s3, %s992_s3 }
  0x1d   :  { %265 = vperm.xlu0 %1234, %v224_v41   ;;  %1133 = vmatpush3.bf16.msra.mxu1 %v1240_v42  ;;  %v1476_v62 = vld [vmem:[%s1636_s7] ss:$0 sm:$0xff] }
  0x1e   :  { %1123 = vmatmul.mubr.msk.bf16.gmra.mxu1 %vm72_vm0, %v59_v40  ;;  %268 = vperm.xlu1 %1235, %v225_v43  }
  0x1f   :  { %1134 = vmatprep.subr.bf16.mxu1 %v1241_v47  ;;  %1156 = vmatprep.subr.bf16.mxu0 %v1244_v50 }
  0x20   :  { %1157 = vmatpush3.bf16.msra.mxu0 %v1244_v50 }
  0x21   :  { %271 = vperm.xlu0 %1234, %v226_v44   ;;  %1135 = vmatpush3.bf16.msra.mxu1 %v1241_v47 }
  0x22   :  { %274 = vperm.xlu1 %1235, %v227_v45   ;;  %1136 = vmatprep.subr.bf16.mxu1 %v1242_v48 }
  0x23   :  { %1158 = vmatprep.subr.bf16.mxu0 %v1245_v51 }
  0x24   :  { %1159 = vmatpush3.bf16.msra.mxu0 %v1245_v51 }
  0x25   :  { %972 = vperm.xlu0 %1234, %v35_v46   ;;  %1137 = vmatpush3.bf16.msra.mxu1 %v1242_v48 }
  0x26   :  { %1160 = vmatprep.subr.bf16.mxu0 %v1246_v52 }
  0x28   :  { %1161 = vmatpush3.bf16.msra.mxu0 %v1246_v52 }
  0x29   :  { %1162 = vmatprep.subr.bf16.mxu0 %v1247_v53 }
  0x2c   :  { %1163 = vmatpush3.bf16.msra.mxu0 %v1247_v53 }
  0x80   :  { %v230_v55 = vpop.permute.xlu0 %229 }
  0x81   :  { %v236_v54 = vpop.permute.xlu1 %235  ;;  %vm276_vm2 = vcmp.eq.s32.totalorder %v1478_v63, %v230_v55 }
  0x82   :  { %vm278_vm4 = vcmp.eq.s32.totalorder %v1478_v63, %v236_v54  ;;  %v292_v13 = vsel %vm276_vm2, 1.0, %v1282_v7  ;;  %vm755_vm2 = vcmask 523264  }
  0x83   :  { %v294_v16 = vsel %vm278_vm4, 1.0, %v1282_v7  ;;  %vm902_vm4 = vcmask 261120  }
  0x84   :  { %v233_v57 = vpop.permute.xlu0 %232 }
  0x85   :  { %v239_v56 = vpop.permute.xlu1 %238  ;;  %vm277_vm3 = vcmp.eq.s32.totalorder %v1478_v63, %v233_v57 }
  0x86   :  { %vm279_vm1 = vcmp.eq.s32.totalorder %v1478_v63, %v239_v56  ;;  %v293_v19 = vsel %vm277_vm3, 1.0, %v1282_v7  ;;  %vm1283_vm3 = vmmov 0  }
  0x87   :  { %v295_v8 = vsel %vm279_vm1, 1.0, %v1282_v7 }
  0x88   :  { %v242_v61 = vpop.permute.xlu0 %241 }
  0x89   :  { %v245_v58 = vpop.permute.xlu1 %244  ;;  %vm280_vm6 = vcmp.eq.s32.totalorder %v1478_v63, %v242_v61 }
  0x8a   :  { %vm281_vm8 = vcmp.eq.s32.totalorder %v1478_v63, %v245_v58  ;;  %v296_v41 = vsel %vm280_vm6, 1.0, %v1282_v7 }
  0x8b   :  { %v297_v42 = vsel %vm281_vm8, 1.0, %v1282_v7 }
  0x8c   :  { %v248_v9 = vpop.permute.xlu0 %247 }
  0x8d   :  { %v251_v1 = vpop.permute.xlu1 %250  ;;  %vm282_vm9 = vcmp.eq.s32.totalorder %v1478_v63, %v248_v9 }
  0x8e   :  { %vm283_vm7 = vcmp.eq.s32.totalorder %v1478_v63, %v251_v1  ;;  %v298_v45 = vsel %vm282_vm9, 1.0, %v1282_v7 }
  0x8f   :  { %v299_v39 = vsel %vm283_vm7, 1.0, %v1282_v7 }
  0x90   :  { %v254_v28 = vpop.permute.xlu0 %253 }
  0x91   :  { %v1491_v17 = vpop.permute.xlu1 %256  ;;  %vm284_vm10 = vcmp.eq.s32.totalorder %v1478_v63, %v254_v28 }
  0x92   :  { %vm285_vm12 = vcmp.eq.s32.totalorder %v1478_v63, %v1491_v17 }
  0x94   :  { %v260_v46 = vpop.permute.xlu0 %259 }
  0x95   :  { %v263_v33 = vpop.permute.xlu1 %262  ;;  %vm286_vm13 = vcmp.eq.s32.totalorder %v1478_v63, %v260_v46 }
  0x96   :  { %vm287_vm11 = vcmp.eq.s32.totalorder %v1478_v63, %v263_v33  ;;  %v302_v9 = vsel %vm286_vm13, 1.0, %v1282_v7 }
  0x98   :  { %v266_v1 = vpop.permute.xlu0 %265 }
  0x99   :  { %v269_v53 = vpop.permute.xlu1 %268  ;;  %vm288_vm14 = vcmp.eq.s32.totalorder %v1478_v63, %v266_v1 }
  0x9a   :  { %vm289_vm0 = vcmp.eq.s32.totalorder %v1478_v63, %v269_v53  ;;  %v304_v28 = vsel %vm288_vm14, 1.0, %v1282_v7 }
  0xc6   :  { %v1112_v60 = vpop.f32.mrf.mxu1 }
  0xc7   :  { %v140_v3 = vadd.f32 %v1112_v60, %v1476_v62 }
  0xc8   :  { %v131_v0 = vpop.f32.mrf.mxu1 }
  0xc9   :  { %v132_v2 = vadd.f32 %v1476_v62, %v131_v0  ;;  %v196_v14 = vmax.f32 %v140_v3, 0.0 }
  0xca   :  { %v1113_v4 = vpop.f32.mrf.mxu1 }
  0xcb   :  { %v143_v5 = vadd.f32 %v1113_v4, %v1476_v62  ;;  %v194_v10 = vmax.f32 %v132_v2, 0.0  ;;  %v310_v25 = vadd.f32 %v294_v16, %v196_v14  ;;  %v303_v2 = vsel %vm287_vm11, 1.0, %v1282_v7 }
  0xcc   :  { %v134_v6 = vpop.f32.mrf.mxu1  ;;  %v300_v4 = vsel %vm284_vm10, 1.0, %v1282_v7 }
  0xcd   :  { %v197_v11 = vmax.f32 %v143_v5, 0.0  ;;  %v135_v12 = vadd.f32 %v1476_v62, %v134_v6  ;;  %v308_v22 = vadd.f32 %v292_v13, %v194_v10  ;;  %v301_v5 = vsel %vm285_vm12, 1.0, %v1282_v7  ;;  %v275_v10 = vpop.permute.xlu1 %274 }
  0xce   :  { %v1116_v15 = vpop.f32.mrf.mxu1  ;;  %vm291_vm15 = vcmp.eq.s32.totalorder %v1478_v63, %v275_v10 }
  0xcf   :  { %v195_v18 = vmax.f32 %v135_v12, 0.0  ;;  %v311_v20 = vadd.f32 %v295_v8, %v197_v11  ;;  %v156_v26 = vadd.f32 %v1116_v15, %v1476_v62 }
  0xd0   :  { %v147_v21 = vpop.f32.mrf.mxu1 }
  0xd1   :  { %v309_v23 = vadd.f32 %v293_v19, %v195_v18  ;;  %v148_v24 = vadd.f32 %v1476_v62, %v147_v21  ;;  %v325_v31 = vpack.c.bf16 %v311_v20, %v310_v25  ;;  %v200_v37 = vmax.f32 %v156_v26, 0.0  ;;  %v272_v21 = vpop.permute.xlu0 %271 }
  0xd2   :  { %v1117_v27 = vpop.f32.mrf.mxu1  ;;  %vm290_vm1 = vcmp.eq.s32.totalorder %v1478_v63, %v272_v21  ;;  %v307_v26 = vsel %vm291_vm15, 1.0, %v1282_v7  ;;  %v1248_v63 = vld [vmem:[%s1633_s4 + $0x10] sm:$0xff]  }
  0xd3   :  { %v324_v29 = vpack.c.bf16 %v309_v23, %v308_v22  ;;  %v159_v30 = vadd.f32 %v1117_v27, %v1476_v62  ;;  %v198_v34 = vmax.f32 %v148_v24, 0.0  ;;  %v314_v50 = vadd.f32 %v298_v45, %v200_v37  ;;  %1164 = vmatprep.subr.bf16.mxu0 %v1248_v63  ;;  %v1250_v37 = vld [vmem:[%s1633_s4] sm:$0xff]  }
  0xd4   :  { %v150_v32 = vpop.f32.mrf.mxu1  ;;  %1165 = vmatpush3.bf16.msra.mxu0 %v1248_v63  ;;  %v1254_v63 = vld [vmem:[%s1634_s5] sm:$0xff]  }
  0xd5   :  { %v201_v35 = vmax.f32 %v159_v30, 0.0  ;;  %v151_v36 = vadd.f32 %v1476_v62, %v150_v32  ;;  %1138 = vmatprep.mubr.msk.bf16.mxu1 %vm384_vm5, %v324_v29  ;;  %v312_v47 = vadd.f32 %v296_v41, %v198_v34  ;;  %v305_v29 = vsel %vm289_vm0, 1.0, %v1282_v7 }
  0xd6   :  { %v1120_v38 = vpop.f32.mrf.mxu1  ;;  %1139 = vmatmul.mubr.msk.bf16.vlgmr.msra.gmra.mxu1 %vm384_vm5, %v325_v31  ;;  %v306_v31 = vsel %vm290_vm1, 1.0, %v1282_v7 }
  0xd7   :  { %v199_v40 = vmax.f32 %v151_v36, 0.0  ;;  %v315_v43 = vadd.f32 %v299_v39, %v201_v35  ;;  %v172_v51 = vadd.f32 %v1120_v38, %v1476_v62  ;;  %v1249_v36 = vld [vmem:[%s1633_s4 + $0x8] sm:$0xff]   ;;  %v1251_v38 = vld [vmem:[%s1634_s5 + $0x18] sm:$0xff]   ;;  %v1252_v39 = vld [vmem:[%s1634_s5 + $0x10] sm:$0xff]  }
  0xd8   :  { %v163_v44 = vpop.f32.mrf.mxu1  ;;  %1166 = vmatprep.subr.bf16.mxu0 %v1249_v36  ;;  %1186 = vmatprep.subr.bf16.mxu1 %v1251_v38 }
  0xd9   :  { %v313_v48 = vadd.f32 %v297_v42, %v199_v40  ;;  %v164_v49 = vadd.f32 %v1476_v62, %v163_v44  ;;  %v327_v56 = vpack.c.bf16 %v315_v43, %v314_v50  ;;  %v204_v61 = vmax.f32 %v172_v51, 0.0  ;;  %1167 = vmatpush3.bf16.msra.mxu0 %v1249_v36  ;;  %1187 = vmatpush3.bf16.msra.mxu1 %v1251_v38  ;;  %v1253_v40 = vld [vmem:[%s1634_s5 + $0x8] sm:$0xff]   ;;  %v1009_v43 = vld [vmem:[%s1636_s7 + $0x1] ss:$0 sm:$0xff]  ;;  %v1024_v38 = vld [vmem:[%s1636_s7 + $0x2] ss:$0 sm:$0xff] }
  0xda   :  { %v1121_v52 = vpop.f32.mrf.mxu1  ;;  %1168 = vmatprep.subr.bf16.mxu0 %v1250_v37  ;;  %1188 = vmatprep.subr.bf16.mxu1 %v1252_v39 }
  0xdb   :  { %v326_v54 = vpack.c.bf16 %v313_v48, %v312_v47  ;;  %v175_v55 = vadd.f32 %v1121_v52, %v1476_v62  ;;  %v202_v58 = vmax.f32 %v164_v49, 0.0  ;;  %v318_v14 = vadd.f32 %v302_v9, %v204_v61 }
  0xdc   :  { %v166_v57 = vpop.f32.mrf.mxu1 }
  0xdd   :  { %v205_v59 = vmax.f32 %v175_v55, 0.0  ;;  %v167_v60 = vadd.f32 %v1476_v62, %v166_v57  ;;  %1142 = vmatprep.mubr.msk.bf16.mxu1 %vm384_vm5, %v326_v54  ;;  %v316_v11 = vadd.f32 %v300_v4, %v202_v58  ;;  %1169 = vmatpush3.bf16.msra.mxu0 %v1250_v37 }
  0xde   :  { %v1124_v0 = vpop.f32.mrf.mxu1  ;;  %1143 = vmatmul.mubr.msk.bf16.gmra.mxu1 %vm384_vm5, %v327_v56  ;;  %1210 = vmatprep.subr.bf16.mxu0 %v1282_v7 }
  0xdf   :  { %v203_v3 = vmax.f32 %v167_v60, 0.0  ;;  %v319_v6 = vadd.f32 %v303_v2, %v205_v59  ;;  %v188_v15 = vadd.f32 %v1124_v0, %v1476_v62  ;;  %1189 = vmatpush3.bf16.msra.mxu1 %v1252_v39 }
  0xe0   :  { %v179_v8 = vpop.f32.mrf.mxu1  ;;  %1190 = vmatprep.subr.bf16.mxu1 %v1253_v40 }
  0xe1   :  { %v317_v12 = vadd.f32 %v301_v5, %v203_v3  ;;  %v180_v13 = vadd.f32 %v1476_v62, %v179_v8  ;;  %v329_v19 = vpack.c.bf16 %v319_v6, %v318_v14  ;;  %v208_v25 = vmax.f32 %v188_v15, 0.0 }
  0xe2   :  { %v1125_v16 = vpop.f32.mrf.mxu1 }
  0xe3   :  { %v328_v17 = vpack.c.bf16 %v317_v12, %v316_v11  ;;  %v191_v18 = vadd.f32 %v1125_v16, %v1476_v62  ;;  %v206_v22 = vmax.f32 %v180_v13, 0.0  ;;  %1191 = vmatpush3.bf16.msra.mxu1 %v1253_v40 }
  0xe4   :  { %v182_v20 = vpop.f32.mrf.mxu1  ;;  %1192 = vmatprep.subr.bf16.mxu1 %v1254_v63 }
  0xe5   :  { %v209_v23 = vmax.f32 %v191_v18, 0.0  ;;  %v183_v24 = vadd.f32 %v1476_v62, %v182_v20  ;;  %1146 = vmatprep.mubr.msk.bf16.mxu1 %vm384_vm5, %v328_v17  ;;  %v320_v32 = vadd.f32 %v304_v28, %v206_v22  ;;  %v322_v62 = vadd.f32 %v306_v31, %v208_v25 }
  0xe6   :  { %1147 = vmatmul.mubr.msk.bf16.gmra.mxu1 %vm384_vm5, %v329_v19 }
  0xe7   :  { %v207_v27 = vmax.f32 %v183_v24, 0.0  ;;  %v323_v30 = vadd.f32 %v307_v26, %v209_v23  ;;  %1193 = vmatpush3.bf16.msra.mxu1 %v1254_v63 }
  0xe9   :  { %v321_v33 = vadd.f32 %v305_v29, %v207_v27  ;;  %v331_v35 = vpack.c.bf16 %v323_v30, %v322_v62 }
  0xeb   :  { %v330_v34 = vpack.c.bf16 %v321_v33, %v320_v32 }
  0xed   :  { %1150 = vmatprep.mubr.msk.bf16.mxu1 %vm384_vm5, %v330_v34 }
  0xee   :  { %1151 = vmatmul.mubr.msk.bf16.gmra.mxu1 %vm384_vm5, %v331_v35 }
 0x196   :  { %v1140_v41 = vpop.f32.mrf.mxu1 }
 0x197   :  { %v452_v47 = vadd.f32 %v1140_v41, %v1009_v43 }
 0x198   :  { %v443_v42 = vpop.f32.mrf.mxu1 }
 0x199   :  { %v444_v45 = vadd.f32 %v1009_v43, %v443_v42  ;;  %v508_v54 = vmax.f32 %v452_v47, 0.0 }
 0x19a   :  { %v1141_v44 = vpop.f32.mrf.mxu1 }
 0x19b   :  { %v455_v46 = vadd.f32 %v1141_v44, %v1009_v43  ;;  %v506_v52 = vmax.f32 %v444_v45, 0.0 }
 0x19c   :  { %v446_v48 = vpop.f32.mrf.mxu1 }
 0x19d   :  { %v447_v49 = vadd.f32 %v1009_v43, %v446_v48  ;;  %v509_v50 = vmax.f32 %v455_v46, 0.0 }
 0x19e   :  { %v1144_v51 = vpop.f32.mrf.mxu1 }
 0x19f   :  { %v507_v53 = vmax.f32 %v447_v49, 0.0  ;;  %v523_v57 = vpack.c.bf16 %v509_v50, %v508_v54  ;;  %v468_v61 = vadd.f32 %v1144_v51, %v1009_v43 }
 0x1a0   :  { %v459_v55 = vpop.f32.mrf.mxu1 }
 0x1a1   :  { %v522_v56 = vpack.c.bf16 %v507_v53, %v506_v52  ;;  %v460_v59 = vadd.f32 %v1009_v43, %v459_v55  ;;  %v512_v6 = vmax.f32 %v468_v61, 0.0 }
 0x1a2   :  { %v1145_v58 = vpop.f32.mrf.mxu1 }
 0x1a3   :  { %v471_v60 = vadd.f32 %v1145_v58, %v1009_v43  ;;  %1170 = vmatprep.mubr.bf16.mxu0 %v522_v56  ;;  %v510_v4 = vmax.f32 %v460_v59, 0.0 }
 0x1a4   :  { %v462_v0 = vpop.f32.mrf.mxu1  ;;  %1171 = vmatmul.mubr.bf16.vlgmr.msra.gmra.mxu0 %v523_v57 }
 0x1a5   :  { %v463_v1 = vadd.f32 %v1009_v43, %v462_v0  ;;  %v513_v2 = vmax.f32 %v471_v60, 0.0 }
 0x1a6   :  { %v1148_v3 = vpop.f32.mrf.mxu1 }
 0x1a7   :  { %v511_v5 = vmax.f32 %v463_v1, 0.0  ;;  %v525_v10 = vpack.c.bf16 %v513_v2, %v512_v6  ;;  %v484_v14 = vadd.f32 %v1148_v3, %v1009_v43 }
 0x1a8   :  { %v475_v8 = vpop.f32.mrf.mxu1 }
 0x1a9   :  { %v524_v9 = vpack.c.bf16 %v511_v5, %v510_v4  ;;  %v476_v12 = vadd.f32 %v1009_v43, %v475_v8  ;;  %v516_v21 = vmax.f32 %v484_v14, 0.0 }
 0x1aa   :  { %v1149_v11 = vpop.f32.mrf.mxu1 }
 0x1ab   :  { %v487_v13 = vadd.f32 %v1149_v11, %v1009_v43  ;;  %1174 = vmatprep.mubr.bf16.mxu0 %v524_v9  ;;  %v514_v19 = vmax.f32 %v476_v12, 0.0 }
 0x1ac   :  { %v478_v15 = vpop.f32.mrf.mxu1  ;;  %1175 = vmatmul.mubr.bf16.gmra.mxu0 %v525_v10 }
 0x1ad   :  { %v479_v16 = vadd.f32 %v1009_v43, %v478_v15  ;;  %v517_v17 = vmax.f32 %v487_v13, 0.0 }
 0x1ae   :  { %v1152_v18 = vpop.f32.mrf.mxu1 }
 0x1af   :  { %v515_v20 = vmax.f32 %v479_v16, 0.0  ;;  %v527_v24 = vpack.c.bf16 %v517_v17, %v516_v21  ;;  %v500_v28 = vadd.f32 %v1152_v18, %v1009_v43 }
 0x1b0   :  { %v491_v22 = vpop.f32.mrf.mxu1 }
 0x1b1   :  { %v526_v23 = vpack.c.bf16 %v515_v20, %v514_v19  ;;  %v492_v26 = vadd.f32 %v1009_v43, %v491_v22  ;;  %v520_v62 = vmax.f32 %v500_v28, 0.0 }
 0x1b2   :  { %v1153_v25 = vpop.f32.mrf.mxu1 }
 0x1b3   :  { %v503_v27 = vadd.f32 %v1153_v25, %v1009_v43  ;;  %1178 = vmatprep.mubr.bf16.mxu0 %v526_v23  ;;  %v518_v32 = vmax.f32 %v492_v26, 0.0 }
 0x1b4   :  { %v494_v29 = vpop.f32.mrf.mxu1  ;;  %1179 = vmatmul.mubr.bf16.gmra.mxu0 %v527_v24 }
 0x1b5   :  { %v495_v30 = vadd.f32 %v1009_v43, %v494_v29  ;;  %v521_v31 = vmax.f32 %v503_v27, 0.0 }
 0x1b7   :  { %v519_v33 = vmax.f32 %v495_v30, 0.0  ;;  %v529_v35 = vpack.c.bf16 %v521_v31, %v520_v62 }
 0x1b9   :  { %v528_v34 = vpack.c.bf16 %v519_v33, %v518_v32  ;;  %v1583_v33 = vld [vmem:[%s1636_s7 + $0x3] ss:$0 sm:$0xff] }
 0x1bb   :  { %1182 = vmatprep.mubr.bf16.mxu0 %v528_v34 }
 0x1bc   :  { %1183 = vmatmul.mubr.bf16.gmra.mxu0 %v529_v35 }
 0x1bd   :  { %1226 = vmatprep.mubr.msk.bf16.mxu0 %vm1283_vm3, %v1282_v7 }
 0x264   :  { %v1172_v36 = vpop.f32.mrf.mxu0 }
 0x265   :  { %v641_v42 = vadd.f32 %v1172_v36, %v1024_v38 }
 0x266   :  { %v632_v37 = vpop.f32.mrf.mxu0 }
 0x267   :  { %v633_v40 = vadd.f32 %v1024_v38, %v632_v37  ;;  %v697_v49 = vmax.f32 %v641_v42, 0.0 }
 0x268   :  { %v1173_v39 = vpop.f32.mrf.mxu0 }
 0x269   :  { %v644_v41 = vadd.f32 %v1173_v39, %v1024_v38  ;;  %v695_v47 = vmax.f32 %v633_v40, 0.0 }
 0x26a   :  { %v635_v43 = vpop.f32.mrf.mxu0 }
 0x26b   :  { %v636_v44 = vadd.f32 %v1024_v38, %v635_v43  ;;  %v698_v45 = vmax.f32 %v644_v41, 0.0 }
 0x26c   :  { %v1176_v46 = vpop.f32.mrf.mxu0 }
 0x26d   :  { %v696_v48 = vmax.f32 %v636_v44, 0.0  ;;  %v712_v52 = vpack.c.bf16 %v698_v45, %v697_v49  ;;  %v657_v56 = vadd.f32 %v1176_v46, %v1024_v38 }
 0x26e   :  { %v648_v50 = vpop.f32.mrf.mxu0 }
 0x26f   :  { %v711_v51 = vpack.c.bf16 %v696_v48, %v695_v47  ;;  %v649_v54 = vadd.f32 %v1024_v38, %v648_v50  ;;  %v701_v1 = vmax.f32 %v657_v56, 0.0 }
 0x270   :  { %v1177_v53 = vpop.f32.mrf.mxu0 }
 0x271   :  { %v660_v55 = vadd.f32 %v1177_v53, %v1024_v38  ;;  %1194 = vmatprep.mubr.msk.bf16.mxu1 %vm755_vm2, %v711_v51  ;;  %v699_v61 = vmax.f32 %v649_v54, 0.0 }
 0x272   :  { %v651_v57 = vpop.f32.mrf.mxu0  ;;  %1195 = vmatmul.mubr.msk.bf16.vlgmr.msra.gmra.mxu1 %vm755_vm2, %v712_v52 }
 0x273   :  { %v652_v58 = vadd.f32 %v1024_v38, %v651_v57  ;;  %v702_v59 = vmax.f32 %v660_v55, 0.0 }
 0x274   :  { %v1180_v60 = vpop.f32.mrf.mxu0 }
 0x275   :  { %v700_v0 = vmax.f32 %v652_v58, 0.0  ;;  %v714_v4 = vpack.c.bf16 %v702_v59, %v701_v1  ;;  %v673_v9 = vadd.f32 %v1180_v60, %v1024_v38 }
 0x276   :  { %v664_v2 = vpop.f32.mrf.mxu0 }
 0x277   :  { %v713_v3 = vpack.c.bf16 %v700_v0, %v699_v61  ;;  %v665_v6 = vadd.f32 %v1024_v38, %v664_v2  ;;  %v705_v16 = vmax.f32 %v673_v9, 0.0 }
 0x278   :  { %v1181_v5 = vpop.f32.mrf.mxu0 }
 0x279   :  { %v676_v8 = vadd.f32 %v1181_v5, %v1024_v38  ;;  %1198 = vmatprep.mubr.msk.bf16.mxu1 %vm755_vm2, %v713_v3  ;;  %v703_v14 = vmax.f32 %v665_v6, 0.0 }
 0x27a   :  { %v667_v10 = vpop.f32.mrf.mxu0  ;;  %1199 = vmatmul.mubr.msk.bf16.gmra.mxu1 %vm755_vm2, %v714_v4 }
 0x27b   :  { %v668_v11 = vadd.f32 %v1024_v38, %v667_v10  ;;  %v706_v12 = vmax.f32 %v676_v8, 0.0 }
 0x27c   :  { %v1184_v13 = vpop.f32.mrf.mxu0 }
 0x27d   :  { %v704_v15 = vmax.f32 %v668_v11, 0.0  ;;  %v716_v19 = vpack.c.bf16 %v706_v12, %v705_v16  ;;  %v689_v23 = vadd.f32 %v1184_v13, %v1024_v38 }
 0x27e   :  { %v680_v17 = vpop.f32.mrf.mxu0 }
 0x27f   :  { %v715_v18 = vpack.c.bf16 %v704_v15, %v703_v14  ;;  %v681_v21 = vadd.f32 %v1024_v38, %v680_v17  ;;  %v709_v29 = vmax.f32 %v689_v23, 0.0 }
 0x280   :  { %v1185_v20 = vpop.f32.mrf.mxu0 }
 0x281   :  { %v692_v22 = vadd.f32 %v1185_v20, %v1024_v38  ;;  %1202 = vmatprep.mubr.msk.bf16.mxu1 %vm755_vm2, %v715_v18  ;;  %v707_v27 = vmax.f32 %v681_v21, 0.0 }
 0x282   :  { %v683_v24 = vpop.f32.mrf.mxu0  ;;  %1203 = vmatmul.mubr.msk.bf16.gmra.mxu1 %vm755_vm2, %v716_v19 }
 0x283   :  { %v684_v25 = vadd.f32 %v1024_v38, %v683_v24  ;;  %v710_v26 = vmax.f32 %v692_v22, 0.0 }
 0x285   :  { %v708_v28 = vmax.f32 %v684_v25, 0.0  ;;  %v718_v31 = vpack.c.bf16 %v710_v26, %v709_v29 }
 0x287   :  { %v717_v30 = vpack.c.bf16 %v708_v28, %v707_v27 }
 0x289   :  { %1206 = vmatprep.mubr.msk.bf16.mxu1 %vm755_vm2, %v717_v30 }
 0x28a   :  { %1207 = vmatmul.mubr.msk.bf16.gmra.mxu1 %vm755_vm2, %v718_v31 }
 0x332   :  { %v1196_v32 = vpop.f32.mrf.mxu1 }
 0x333   :  { %v823_v34 = vadd.f32 %v1196_v32, %v1583_v33 }
 0x334   :  { %v814_v62 = vpop.f32.mrf.mxu1 }
 0x335   :  { %v815_v63 = vadd.f32 %v1583_v33, %v814_v62  ;;  %v879_v38 = vmax.f32 %v823_v34, 0.0  ;;  %v901_v62 = vld [vmem:[%s1635_s6] sm:$0xf]  ;;  %v973_v34 = vpop.permute.xlu0 %972  ;;  %s1259_s6 = scalar_lea.vmem %s992_s3, 16 }
 0x336   :  { %v1197_v35 = vpop.f32.mrf.mxu1  ;;  %p1260_p0 = scmp.ne.s32.totalorder %s992_s3, %s1259_s6  ;;  %p1265_p2 = scmp.lt.s32.totalorder %s1263_s19, %s1259_s6 }
 0x337   :  { %v826_v36 = vadd.f32 %v1197_v35, %v1583_v33  ;;  %v877_v42 = vmax.f32 %v815_v63, 0.0 }
 0x338   :  { %v817_v37 = vpop.f32.mrf.mxu1  ;;  %p1266_p3 = por %p1265_p2, %p1264_p1 }
 0x339   :  { %v880_v39 = vmax.f32 %v826_v36, 0.0  ;;  %v818_v40 = vadd.f32 %v1583_v33, %v817_v37 }
 0x33a   :  { %v1200_v41 = vpop.f32.mrf.mxu1  ;;  %p1267_p4 = pnand %p1266_p3, %p1260_p0 }
 0x33b   :  { %v1589_v43 = vpack.c.bf16 %v880_v39, %v879_v38  ;;  %v878_v44 = vmax.f32 %v818_v40, 0.0  ;;  %v839_v20 = vadd.f32 %v1200_v41, %v1583_v33 }
 0x33c   :  { %v830_v45 = vpop.f32.mrf.mxu1 }
 0x33d   :  { %v1591_v46 = vpack.c.bf16 %v878_v44, %v877_v42  ;;  %v883_v23 = vmax.f32 %v839_v20, 0.0  ;;  %v831_v26 = vadd.f32 %v1583_v33, %v830_v45  ;;  %v910_v32 = vsel %vm902_vm4, %v1589_v43, 0 }
 0x33e   :  { %v1201_v47 = vpop.f32.mrf.mxu1 }
 0x33f   :  { %v842_v18 = vadd.f32 %v1201_v47, %v1583_v33  ;;  %v881_v29 = vmax.f32 %v831_v26, 0.0 }
 0x340   :  { %v833_v48 = vpop.f32.mrf.mxu1 }
 0x341   :  { %v884_v21 = vmax.f32 %v842_v18, 0.0  ;;  %v834_v25 = vadd.f32 %v1583_v33, %v833_v48 }
 0x342   :  { %v1204_v49 = vpop.f32.mrf.mxu1 }
 0x343   :  { %v855_v8 = vadd.f32 %v1204_v49, %v1583_v33  ;;  %v896_v24 = vpack.c.bf16 %v884_v21, %v883_v23  ;;  %v882_v27 = vmax.f32 %v834_v25, 0.0 }
 0x344   :  { %v846_v50 = vpop.f32.mrf.mxu1 }
 0x345   :  { %v887_v11 = vmax.f32 %v855_v8, 0.0  ;;  %v847_v14 = vadd.f32 %v1583_v33, %v846_v50  ;;  %v916_v28 = vsel %vm902_vm4, %v896_v24, 0  ;;  %v895_v30 = vpack.c.bf16 %v882_v27, %v881_v29 }
 0x346   :  { %v1205_v51 = vpop.f32.mrf.mxu1 }
 0x347   :  { %v858_v5 = vadd.f32 %v1205_v51, %v1583_v33  ;;  %v885_v17 = vmax.f32 %v847_v14, 0.0  ;;  %v913_v31 = vsel %vm902_vm4, %v895_v30, 0 }
 0x348   :  { %v849_v52 = vpop.f32.mrf.mxu1 }
 0x349   :  { %v888_v9 = vmax.f32 %v858_v5, 0.0  ;;  %v850_v13 = vadd.f32 %v1583_v33, %v849_v52 }
 0x34a   :  { %v1208_v53 = vpop.f32.mrf.mxu1 }
 0x34b   :  { %v871_v55 = vadd.f32 %v1208_v53, %v1583_v33  ;;  %v898_v12 = vpack.c.bf16 %v888_v9, %v887_v11  ;;  %v886_v15 = vmax.f32 %v850_v13, 0.0 }
 0x34c   :  { %v862_v54 = vpop.f32.mrf.mxu1 }
 0x34d   :  { %v891_v59 = vmax.f32 %v871_v55, 0.0  ;;  %v863_v0 = vadd.f32 %v1583_v33, %v862_v54  ;;  %v922_v16 = vsel %vm902_vm4, %v898_v12, 0  ;;  %v897_v19 = vpack.c.bf16 %v886_v15, %v885_v17 }
 0x34e   :  { %v1209_v56 = vpop.f32.mrf.mxu1 }
 0x34f   :  { %v874_v57 = vadd.f32 %v1209_v56, %v1583_v33  ;;  %v889_v4 = vmax.f32 %v863_v0, 0.0  ;;  %v919_v22 = vsel %vm902_vm4, %v897_v19, 0 }
 0x350   :  { %v865_v58 = vpop.f32.mrf.mxu1 }
 0x351   :  { %v892_v60 = vmax.f32 %v874_v57, 0.0  ;;  %v866_v61 = vadd.f32 %v1583_v33, %v865_v58  ;;  %v907_v33 = vsel %vm902_vm4, %v1591_v46, 0 }
 0x353   :  { %v900_v1 = vpack.c.bf16 %v892_v60, %v891_v59  ;;  %v890_v2 = vmax.f32 %v866_v61, 0.0 }
 0x355   :  { %v928_v3 = vsel %vm902_vm4, %v900_v1, 0  ;;  %v899_v6 = vpack.c.bf16 %v890_v2, %v889_v4 }
 0x356   :  { %1211 = vmatpush3.bf16.xpose.msra.mxu0 %v928_v3 }
 0x357   :  { %1212 = vmatprep.subr.bf16.mxu0 %v1282_v7  ;;  %v925_v10 = vsel %vm902_vm4, %v899_v6, 0 }
 0x35e   :  { %1213 = vmatpush3.bf16.xpose.msra.mxu0 %v925_v10 }
 0x35f   :  { %1214 = vmatprep.subr.bf16.mxu0 %v1282_v7 }
 0x366   :  { %1215 = vmatpush3.bf16.xpose.msra.mxu0 %v922_v16 }
 0x367   :  { %1216 = vmatprep.subr.bf16.mxu0 %v1282_v7 }
 0x36e   :  { %1217 = vmatpush3.bf16.xpose.msra.mxu0 %v919_v22 }
 0x36f   :  { %1218 = vmatprep.subr.bf16.mxu0 %v1282_v7 }
 0x376   :  { %1219 = vmatpush3.bf16.xpose.msra.mxu0 %v916_v28 }
 0x377   :  { %1220 = vmatprep.subr.bf16.mxu0 %v1282_v7 }
 0x37e   :  { %1221 = vmatpush3.bf16.xpose.msra.mxu0 %v913_v31 }
 0x37f   :  { %1222 = vmatprep.subr.bf16.mxu0 %v1282_v7 }
 0x386   :  { %1223 = vmatpush3.bf16.xpose.msra.mxu0 %v910_v32 }
 0x387   :  { %1224 = vmatprep.subr.bf16.mxu0 %v1282_v7 }
 0x38e   :  { %1225 = vmatpush3.bf16.xpose.msra.mxu0 %v907_v33 }
 0x395   :  { %1227 = vmatmul.mubr.msk.bf16.vlgmr.msra.gmra.mxu0 %vm902_vm4, %v901_v62 }
 0x455   :  { %v964_v35 = vpop.f32.mrf.mxu0 }
 0x456   :  { %v975_v63 = vadd.f32 %v973_v34, %v964_v35 }
 0x457   :  { %v1228_v36 = vpop.f32.mrf.mxu0 }
 0x458   :  { %v1047_v37 = vmul.f32 -1.442695, %v975_v63 }
 0x459   :  { %v967_v38 = vpop.f32.mrf.mxu0 }
 0x45a   :  { %1255 = vpow2.f32 %v1047_v37 }
 0x45b   :  { %v1229_v39 = vpop.f32.mrf.mxu0 }
 0x467   :  { %v1256_v40 = vpop.eup %1255 }
 0x468   :  { %v979_v7 = vadd.f32 1.0, %v1256_v40 }
 0x46a   :  { %1257 = vrcp.f32 %v979_v7 }
 0x477   :  { %v1258_v41 = vpop.eup %1257 }
 0x478   :  { %v982_v42 = vmul.f32 4.0, %v1258_v41 }
 0x47a   :  { %v983_v43 = vadd.f32 1.0, %v982_v42 }
 0x47c   :  { %984 = vst [vmem:[#allocation2] sm:$0x1] %v983_v43 }
 0x47d   :  { %1270 = shalt.err (!%p1267_p4)
}
 0x47e   :  { %994 = dma.vmem_to_hbm [thread:$0]  %s992_s3, 16, %s1637_s8, [#allocation3]  }
 0x47f   :  { %1279 = dma.done.wait [#allocation3], 16  }
 0x480   :  { %1280 = vsyncadd [#allocation3], 4294967280 }
 0x481   :  { %998 = vsyncpa [#allocation3], 1 }

</bundles_post_ra>
